<compile_context>
chip_gen: v7x
topology: tpu7x:2x2x1
jax: 0.10.0
libtpu: 0.0.40
codegen_flags: <defaults>
</compile_context>

<pallas_src>
import jax
import jax.numpy as jnp
from jax.experimental import pallas as pl
from jax.experimental.pallas import tpu as pltpu

LANE = 128
_VMEM_LIMIT = 32 * 1024 * 1024  # safe on v5e/v6e (128 MiB phys) and v7x (64 MiB)


def _sublane(dtype) -> int:
    """Packed sublane multiple: 8 for 32-bit, 16 for 16-bit, 32 for 8-bit."""
    itemsize = jnp.dtype(dtype).itemsize
    return 8 * max(1, 4 // itemsize)


def _vmem_capacity_bytes() -> int:
    try:
        return int(pltpu.get_tpu_info().vmem_capacity_bytes)
    except Exception:
        return 128 * 1024 * 1024


# v7x-class chips (64 MiB VMEM, ~3.2 TB/s HBM) want ~4 MiB tiles so the
# ~0.35 us per-grid-step overhead stays small; 2 MiB is plenty on v5e/v6e.
_DEFAULT_TILE_BYTES = (4 * 1024 * 1024
                       if _vmem_capacity_bytes() <= 64 * 1024 * 1024
                       else 2 * 1024 * 1024)


# ---------------------------------------------------------------------------
# Generic Pallas residual add (fallback path for arbitrary wrapped fn)
# ---------------------------------------------------------------------------

def _residual_add_kernel(y_ref, x_ref, o_ref):
    # Elementwise VPU add on one (tm, 128) lane-dense tile.
    o_ref[...] = y_ref[...] + x_ref[...]


def residual_add(y, x, *, target_tile_bytes=None):
    """Pallas-accelerated `y + x` for equal-shaped arrays.

    Aligned sizes (n % 128 == 0, the common case) run zero-copy: contiguous
    reshape to a lane-dense (rows, 128) slab, large blocks, output aliased
    onto y's (dead) buffer.  Misaligned sizes fall back to a plain XLA add —
    that is strictly cheaper than jnp.pad / prefix-slice round-trips, which
    would add a full extra HBM read+write of both operands.
    """
    assert y.shape == x.shape, (y.shape, x.shape)
    assert y.dtype == x.dtype, (y.dtype, x.dtype)

    orig_shape, dtype = x.shape, x.dtype
    n = x.size
    if n == 0:
        return y
    if n % LANE != 0:
        # Misaligned: plain XLA elementwise add is already at HBM roofline.
        return y + x

    if target_tile_bytes is None:
        target_tile_bytes = _DEFAULT_TILE_BYTES
    itemsize = jnp.dtype(dtype).itemsize
    sub = _sublane(dtype)
    rows = n // LANE

    # Pick the block size from a byte budget; keep >=2 and preferably an even
    # number of grid steps so both of v7x's TensorCores get balanced work
    # (harmless on single-TC v5e/v6e).
    budget_rows = max(sub, (target_tile_bytes // (LANE * itemsize)) // sub * sub)
    if rows < 2 * sub:
        tm = rows                                     # single full-extent block
    elif rows <= 2 * budget_rows:
        tm = pl.cdiv(pl.cdiv(rows, 2), sub) * sub     # exactly 2 (even) steps
    else:
        tm = budget_rows
        steps = pl.cdiv(rows, tm)
        if steps % 2 == 1 and steps < 16:             # round small step counts to even
            tm = pl.cdiv(pl.cdiv(rows, steps + 1), sub) * sub
    steps = pl.cdiv(rows, tm)                         # ragged last block is masked

    yf = y.reshape(rows, LANE)   # contiguous reshape: free
    xf = x.reshape(rows, LANE)

    nbytes = n * itemsize
    out = pl.pallas_call(
        _residual_add_kernel,
        out_shape=jax.ShapeDtypeStruct((rows, LANE), dtype),
        grid_spec=pltpu.PrefetchScalarGridSpec(
            num_scalar_prefetch=0,
            grid=(steps,),
            in_specs=[
                pl.BlockSpec((tm, LANE), lambda i: (i, 0)),
                pl.BlockSpec((tm, LANE), lambda i: (i, 0)),
            ],
            out_specs=pl.BlockSpec((tm, LANE), lambda i: (i, 0)),
        ),
        # y = fn(x) is a dead intermediate inside the jit, so adding in place
        # on its buffer is safe (XLA inserts a protective copy otherwise).
        input_output_aliases={0: 0},
        compiler_params=pltpu.CompilerParams(
            dimension_semantics=("parallel",),
            vmem_limit_bytes=_VMEM_LIMIT,
        ),
        cost_estimate=pl.CostEstimate(
            flops=n, transcendentals=0, bytes_accessed=3 * nbytes),
    )(yf, xf)

    return out.reshape(orig_shape)


# ---------------------------------------------------------------------------
# Fused kernel: 1x1 conv (channel mix) + bias + residual add in ONE HBM pass
# ---------------------------------------------------------------------------

def _conv1x1_residual_kernel(w_ref, b_ref, x_ref, o_ref):
    # w_ref: SMEM (C*C,) flat weights; b_ref: SMEM (C,) bias (scalar prefetch).
    # x_ref / o_ref: (C, br, 128) dense per-channel sub-slabs (batch squeezed).
    C = x_ref.shape[0]
    cdt = x_ref.dtype                 # compute in the input dtype (bf16 stays
                                      # native on v6e/v7x; f32 path unchanged)
    xs = [x_ref[c] for c in range(C)]  # load each input channel once
    for d in range(C):
        # out[d] = x[d] + b[d] + sum_c w[d,c] * x[c]
        # Scalar-from-SMEM x vreg broadcasts are free on the VPU (no XLU work,
        # no MXU push/pop for a tiny C<=32 contraction — the op is HBM-bound).
        acc = xs[d] + b_ref[d].astype(cdt)
        for c in range(C):
            acc = acc + w_ref[d * C + c].astype(cdt) * xs[c]
        o_ref[d] = acc.astype(o_ref.dtype)


def conv1x1_residual(x, w, b, *, target_tile_bytes=None):
    """Fused Residual(1x1 conv): out[n,d,h,w] = sum_c w[d,c]*x[n,c,h,w] + b[d] + x[n,d,h,w]."""
    N, C, H, W = x.shape
    assert w.shape == (C, C), w.shape
    assert b.shape == (C,), b.shape
    dtype = x.dtype

    if C > 32:
        # Large channel counts want an MXU contraction; use the generic path.
        y = jnp.einsum("dc,nchw->ndhw", w, x) + b[None, :, None, None]
        return residual_add(y, x)

    if target_tile_bytes is None:
        target_tile_bytes = _DEFAULT_TILE_BYTES
    itemsize = jnp.dtype(dtype).itemsize
    sub = _sublane(dtype)

    P = H * W
    rows = pl.cdiv(P, LANE)          # lane-dense rows per channel
    p_pad = rows * LANE

    x3 = x.reshape(N, C, P)
    if p_pad != P:
        # TODO(synk): a masked last-lane-tile store would avoid this copy; it
        # is only taken when H*W is not a multiple of 128.
        x3 = jnp.pad(x3, ((0, 0), (0, 0), (0, p_pad - P)))
    # Dense per-channel (rows, 128) sub-slabs: no sublane padding even for
    # tiny channel counts (the old (C, tp) tile wasted half of every vreg).
    x4 = x3.reshape(N, C, rows, LANE)

    # Block rows from a byte budget; keep >= 2 grid steps when N == 1 so both
    # of v7x's TensorCores get work.
    budget_rows = max(sub, (target_tile_bytes // (C * LANE * itemsize)) // sub * sub)
    if rows <= budget_rows:
        if N >= 2 or rows < 2 * sub:
            br = rows                                   # full extent, one p-block
        else:
            br = pl.cdiv(pl.cdiv(rows, 2), sub) * sub   # N==1: split into 2 p-blocks
    else:
        br = budget_rows
    p_steps = pl.cdiv(rows, br)                         # ragged last block is masked

    # Weights/bias as SMEM scalars via scalar prefetch (f32 scalars; per-scalar
    # cast back to the compute dtype inside the kernel is free).
    w_sm = w.reshape(-1).astype(jnp.float32)
    b_sm = b.astype(jnp.float32)

    flops = 2 * N * P * C * (C + 1)
    bytes_accessed = 2 * x.size * itemsize + (C * C + C) * 4

    out = pl.pallas_call(
        _conv1x1_residual_kernel,
        out_shape=jax.ShapeDtypeStruct((N, C, rows, LANE), dtype),
        grid_spec=pltpu.PrefetchScalarGridSpec(
            num_scalar_prefetch=2,   # w, b -> SMEM
            grid=(N, p_steps),
            in_specs=[
                pl.BlockSpec((None, C, br, LANE),
                             lambda n, p, w_r, b_r: (n, 0, p, 0)),   # x tile
            ],
            out_specs=pl.BlockSpec((None, C, br, LANE),
                                   lambda n, p, w_r, b_r: (n, 0, p, 0)),
        ),
        compiler_params=pltpu.CompilerParams(
            dimension_semantics=("parallel", "parallel"),
            vmem_limit_bytes=_VMEM_LIMIT,
        ),
        cost_estimate=pl.CostEstimate(
            flops=flops, transcendentals=0, bytes_accessed=bytes_accessed),
    )(w_sm, b_sm, x4)

    out = out.reshape(N, C, p_pad)
    if p_pad != P:
        out = out[:, :, :P]
    return out.reshape(N, C, H, W)


# ---------------------------------------------------------------------------
# Residual module
# ---------------------------------------------------------------------------

class Residual:
    """JAX/Pallas port of `Residual(nn.Module)`: fn(x, *args, **kwargs) + x.

    If `fused` is given it must compute fn(x, ...) + x in a single Pallas
    kernel (preferred: avoids writing fn(x) to HBM and reading it back).
    Otherwise fn runs as plain JAX and the residual add runs in Pallas when
    `use_pallas_add=True`.  Note: if fn's last op is elementwise-fusable, XLA
    would fuse `fn(x) + x` into fn's epilogue and save one full array read —
    pass use_pallas_add=False in that case.
    """

    def __init__(self, fn, fused=None, use_pallas_add=True):
        self.fn = fn
        self.fused = fused
        self.use_pallas_add = use_pallas_add

    def __call__(self, x, *args, **kwargs):
        if self.fused is not None:
            return self.fused(x, *args, **kwargs)
        y = self.fn(x, *args, **kwargs)
        if self.use_pallas_add:
            return residual_add(y, x)
        return y + x


# Example wrapped sub-module: deterministic 1x1 conv (NCHW).
def make_pointwise_conv(key, channels, dtype=jnp.float32):
    wkey, bkey = jax.random.split(key)
    w = jax.random.normal(wkey, (channels, channels), dtype) * 0.1
    b = jax.random.normal(bkey, (channels,), dtype) * 0.01

    def fn(x):  # plain-JAX reference 1x1 conv (NCHW)
        return jnp.einsum("dc,nchw->ndhw", w, x) + b[None, :, None, None]

    def fused(x):  # fused Pallas conv + bias + residual (one HBM pass)
        return conv1x1_residual(x, w, b)

    return fn, fused, (w, b)


# ----------------------------------- main ------------------------------------

if __name__ == "__main__":
    key = jax.random.PRNGKey(0)
    kx, kp = jax.random.split(key)

    N, C, H, W = 2, 4, 16, 16  # NCHW, small demo shape
    x = jax.random.normal(kx, (N, C, H, W), jnp.float32)

    fn, fused, _params = make_pointwise_conv(kp, C)

    # Preferred path: fully fused conv + residual kernel.
    block_fused = Residual(fn, fused=fused)
    out_fused = jax.block_until_ready(jax.jit(block_fused)(x))

    # Generic path (arbitrary fn): plain-JAX fn + Pallas residual add.
    block_generic = Residual(fn)
    out_generic = jax.block_until_ready(jax.jit(block_generic)(x))

    ref = fn(x) + x
    assert out_fused.shape == x.shape and out_fused.dtype == x.dtype
    assert jnp.allclose(out_fused, ref, atol=1e-5, rtol=1e-5)
    assert jnp.allclose(out_generic, ref, atol=1e-5, rtol=1e-5)

    print("KERNEL_OK")
</pallas_src>

<mosaic_0001>
module attributes {stable_mosaic.version = 11 : i64} {
  func.func @_conv1x1_residual_kernel(%arg0: i32, %arg1: i32, %arg2: memref<16xf32, #tpu.memory_space<smem>>, %arg3: memref<4xf32, #tpu.memory_space<smem>>, %arg4: memref<1x4x2x128xf32, #tpu.memory_space<vmem>>, %arg5: memref<1x4x2x128xf32, #tpu.memory_space<vmem>>) attributes {dimension_semantics = [#tpu.dimension_semantics<parallel>, #tpu.dimension_semantics<parallel>], iteration_bounds = array<i64: 2, 1>, scalar_prefetch = 2 : i64, scratch_operands = 0 : i64, tpu.core_type = #tpu.core_type<tc>, window_params = [{transform_indices = @transform_0, window_bounds = array<i64: 1, 4, 2, 128>}, {transform_indices = @transform_1, window_bounds = array<i64: 1, 4, 2, 128>}]} {
    %c0 = arith.constant 0 : index
    %c0_0 = arith.constant 0 : index
    %c0_1 = arith.constant 0 : index
    %c0_2 = arith.constant 0 : index
    %0 = vector.load %arg4[%c0, %c0_0, %c0_1, %c0_2] : memref<1x4x2x128xf32, #tpu.memory_space<vmem>>, vector<1x1x2x128xf32>
    %1 = vector.shape_cast %0 : vector<1x1x2x128xf32> to vector<2x128xf32>
    %c0_3 = arith.constant 0 : index
    %c1 = arith.constant 1 : index
    %c0_4 = arith.constant 0 : index
    %c0_5 = arith.constant 0 : index
    %2 = vector.load %arg4[%c0_3, %c1, %c0_4, %c0_5] : memref<1x4x2x128xf32, #tpu.memory_space<vmem>>, vector<1x1x2x128xf32>
    %3 = vector.shape_cast %2 : vector<1x1x2x128xf32> to vector<2x128xf32>
    %c0_6 = arith.constant 0 : index
    %c2 = arith.constant 2 : index
    %c0_7 = arith.constant 0 : index
    %c0_8 = arith.constant 0 : index
    %4 = vector.load %arg4[%c0_6, %c2, %c0_7, %c0_8] : memref<1x4x2x128xf32, #tpu.memory_space<vmem>>, vector<1x1x2x128xf32>
    %5 = vector.shape_cast %4 : vector<1x1x2x128xf32> to vector<2x128xf32>
    %c0_9 = arith.constant 0 : index
    %c3 = arith.constant 3 : index
    %c0_10 = arith.constant 0 : index
    %c0_11 = arith.constant 0 : index
    %6 = vector.load %arg4[%c0_9, %c3, %c0_10, %c0_11] : memref<1x4x2x128xf32, #tpu.memory_space<vmem>>, vector<1x1x2x128xf32>
    %7 = vector.shape_cast %6 : vector<1x1x2x128xf32> to vector<2x128xf32>
    %c0_12 = arith.constant 0 : index
    %8 = memref.load %arg3[%c0_12] : memref<4xf32, #tpu.memory_space<smem>>
    %9 = vector.broadcast %8 : f32 to vector<2x128xf32>
    %10 = arith.addf %1, %9 : vector<2x128xf32>
    %c0_13 = arith.constant 0 : index
    %11 = memref.load %arg2[%c0_13] : memref<16xf32, #tpu.memory_space<smem>>
    %12 = vector.broadcast %11 : f32 to vector<2x128xf32>
    %13 = arith.mulf %12, %1 : vector<2x128xf32>
    %14 = arith.addf %10, %13 : vector<2x128xf32>
    %c1_14 = arith.constant 1 : index
    %15 = memref.load %arg2[%c1_14] : memref<16xf32, #tpu.memory_space<smem>>
    %16 = vector.broadcast %15 : f32 to vector<2x128xf32>
    %17 = arith.mulf %16, %3 : vector<2x128xf32>
    %18 = arith.addf %14, %17 : vector<2x128xf32>
    %c2_15 = arith.constant 2 : index
    %19 = memref.load %arg2[%c2_15] : memref<16xf32, #tpu.memory_space<smem>>
    %20 = vector.broadcast %19 : f32 to vector<2x128xf32>
    %21 = arith.mulf %20, %5 : vector<2x128xf32>
    %22 = arith.addf %18, %21 : vector<2x128xf32>
    %c3_16 = arith.constant 3 : index
    %23 = memref.load %arg2[%c3_16] : memref<16xf32, #tpu.memory_space<smem>>
    %24 = vector.broadcast %23 : f32 to vector<2x128xf32>
    %25 = arith.mulf %24, %7 : vector<2x128xf32>
    %26 = arith.addf %22, %25 : vector<2x128xf32>
    %c0_17 = arith.constant 0 : index
    %c0_18 = arith.constant 0 : index
    %c0_19 = arith.constant 0 : index
    %c0_20 = arith.constant 0 : index
    %27 = vector.load %arg5[%c0_17, %c0_18, %c0_19, %c0_20] : memref<1x4x2x128xf32, #tpu.memory_space<vmem>>, vector<1x1x2x128xf32>
    %28 = vector.shape_cast %27 : vector<1x1x2x128xf32> to vector<2x128xf32>
    %29 = vector.shape_cast %26 : vector<2x128xf32> to vector<1x1x2x128xf32>
    tpu.vector_store %arg5[%c0_17, %c0_18, %c0_19, %c0_20], %29 {strides = array<i32>} : memref<1x4x2x128xf32, #tpu.memory_space<vmem>>, vector<1x1x2x128xf32>,
    %c1_21 = arith.constant 1 : index
    %30 = memref.load %arg3[%c1_21] : memref<4xf32, #tpu.memory_space<smem>>
    %31 = vector.broadcast %30 : f32 to vector<2x128xf32>
    %32 = arith.addf %3, %31 : vector<2x128xf32>
    %c4 = arith.constant 4 : index
    %33 = memref.load %arg2[%c4] : memref<16xf32, #tpu.memory_space<smem>>
    %34 = vector.broadcast %33 : f32 to vector<2x128xf32>
    %35 = arith.mulf %34, %1 : vector<2x128xf32>
    %36 = arith.addf %32, %35 : vector<2x128xf32>
    %c5 = arith.constant 5 : index
    %37 = memref.load %arg2[%c5] : memref<16xf32, #tpu.memory_space<smem>>
    %38 = vector.broadcast %37 : f32 to vector<2x128xf32>
    %39 = arith.mulf %38, %3 : vector<2x128xf32>
    %40 = arith.addf %36, %39 : vector<2x128xf32>
    %c6 = arith.constant 6 : index
    %41 = memref.load %arg2[%c6] : memref<16xf32, #tpu.memory_space<smem>>
    %42 = vector.broadcast %41 : f32 to vector<2x128xf32>
    %43 = arith.mulf %42, %5 : vector<2x128xf32>
    %44 = arith.addf %40, %43 : vector<2x128xf32>
    %c7 = arith.constant 7 : index
    %45 = memref.load %arg2[%c7] : memref<16xf32, #tpu.memory_space<smem>>
    %46 = vector.broadcast %45 : f32 to vector<2x128xf32>
    %47 = arith.mulf %46, %7 : vector<2x128xf32>
    %48 = arith.addf %44, %47 : vector<2x128xf32>
    %c0_22 = arith.constant 0 : index
    %c1_23 = arith.constant 1 : index
    %c0_24 = arith.constant 0 : index
    %c0_25 = arith.constant 0 : index
    %49 = vector.load %arg5[%c0_22, %c1_23, %c0_24, %c0_25] : memref<1x4x2x128xf32, #tpu.memory_space<vmem>>, vector<1x1x2x128xf32>
    %50 = vector.shape_cast %49 : vector<1x1x2x128xf32> to vector<2x128xf32>
    %51 = vector.shape_cast %48 : vector<2x128xf32> to vector<1x1x2x128xf32>
    tpu.vector_store %arg5[%c0_22, %c1_23, %c0_24, %c0_25], %51 {strides = array<i32>} : memref<1x4x2x128xf32, #tpu.memory_space<vmem>>, vector<1x1x2x128xf32>,
    %c2_26 = arith.constant 2 : index
    %52 = memref.load %arg3[%c2_26] : memref<4xf32, #tpu.memory_space<smem>>
    %53 = vector.broadcast %52 : f32 to vector<2x128xf32>
    %54 = arith.addf %5, %53 : vector<2x128xf32>
    %c8 = arith.constant 8 : index
    %55 = memref.load %arg2[%c8] : memref<16xf32, #tpu.memory_space<smem>>
    %56 = vector.broadcast %55 : f32 to vector<2x128xf32>
    %57 = arith.mulf %56, %1 : vector<2x128xf32>
    %58 = arith.addf %54, %57 : vector<2x128xf32>
    %c9 = arith.constant 9 : index
    %59 = memref.load %arg2[%c9] : memref<16xf32, #tpu.memory_space<smem>>
    %60 = vector.broadcast %59 : f32 to vector<2x128xf32>
    %61 = arith.mulf %60, %3 : vector<2x128xf32>
    %62 = arith.addf %58, %61 : vector<2x128xf32>
    %c10 = arith.constant 10 : index
    %63 = memref.load %arg2[%c10] : memref<16xf32, #tpu.memory_space<smem>>
    %64 = vector.broadcast %63 : f32 to vector<2x128xf32>
    %65 = arith.mulf %64, %5 : vector<2x128xf32>
    %66 = arith.addf %62, %65 : vector<2x128xf32>
    %c11 = arith.constant 11 : index
    %67 = memref.load %arg2[%c11] : memref<16xf32, #tpu.memory_space<smem>>
    %68 = vector.broadcast %67 : f32 to vector<2x128xf32>
    %69 = arith.mulf %68, %7 : vector<2x128xf32>
    %70 = arith.addf %66, %69 : vector<2x128xf32>
    %c0_27 = arith.constant 0 : index
    %c2_28 = arith.constant 2 : index
    %c0_29 = arith.constant 0 : index
    %c0_30 = arith.constant 0 : index
    %71 = vector.load %arg5[%c0_27, %c2_28, %c0_29, %c0_30] : memref<1x4x2x128xf32, #tpu.memory_space<vmem>>, vector<1x1x2x128xf32>
    %72 = vector.shape_cast %71 : vector<1x1x2x128xf32> to vector<2x128xf32>
    %73 = vector.shape_cast %70 : vector<2x128xf32> to vector<1x1x2x128xf32>
    tpu.vector_store %arg5[%c0_27, %c2_28, %c0_29, %c0_30], %73 {strides = array<i32>} : memref<1x4x2x128xf32, #tpu.memory_space<vmem>>, vector<1x1x2x128xf32>,
    %c3_31 = arith.constant 3 : index
    %74 = memref.load %arg3[%c3_31] : memref<4xf32, #tpu.memory_space<smem>>
    %75 = vector.broadcast %74 : f32 to vector<2x128xf32>
    %76 = arith.addf %7, %75 : vector<2x128xf32>
    %c12 = arith.constant 12 : index
    %77 = memref.load %arg2[%c12] : memref<16xf32, #tpu.memory_space<smem>>
    %78 = vector.broadcast %77 : f32 to vector<2x128xf32>
    %79 = arith.mulf %78, %1 : vector<2x128xf32>
    %80 = arith.addf %76, %79 : vector<2x128xf32>
    %c13 = arith.constant 13 : index
    %81 = memref.load %arg2[%c13] : memref<16xf32, #tpu.memory_space<smem>>
    %82 = vector.broadcast %81 : f32 to vector<2x128xf32>
    %83 = arith.mulf %82, %3 : vector<2x128xf32>
    %84 = arith.addf %80, %83 : vector<2x128xf32>
    %c14 = arith.constant 14 : index
    %85 = memref.load %arg2[%c14] : memref<16xf32, #tpu.memory_space<smem>>
    %86 = vector.broadcast %85 : f32 to vector<2x128xf32>
    %87 = arith.mulf %86, %5 : vector<2x128xf32>
    %88 = arith.addf %84, %87 : vector<2x128xf32>
    %c15 = arith.constant 15 : index
    %89 = memref.load %arg2[%c15] : memref<16xf32, #tpu.memory_space<smem>>
    %90 = vector.broadcast %89 : f32 to vector<2x128xf32>
    %91 = arith.mulf %90, %7 : vector<2x128xf32>
    %92 = arith.addf %88, %91 : vector<2x128xf32>
    %c0_32 = arith.constant 0 : index
    %c3_33 = arith.constant 3 : index
    %c0_34 = arith.constant 0 : index
    %c0_35 = arith.constant 0 : index
    %93 = vector.load %arg5[%c0_32, %c3_33, %c0_34, %c0_35] : memref<1x4x2x128xf32, #tpu.memory_space<vmem>>, vector<1x1x2x128xf32>
    %94 = vector.shape_cast %93 : vector<1x1x2x128xf32> to vector<2x128xf32>
    %95 = vector.shape_cast %92 : vector<2x128xf32> to vector<1x1x2x128xf32>
    tpu.vector_store %arg5[%c0_32, %c3_33, %c0_34, %c0_35], %95 {strides = array<i32>} : memref<1x4x2x128xf32, #tpu.memory_space<vmem>>, vector<1x1x2x128xf32>,
    return
  }
  func.func @transform_0(%arg0: i32, %arg1: i32, %arg2: memref<16xf32, #tpu.memory_space<smem>>, %arg3: memref<4xf32, #tpu.memory_space<smem>>) -> (i32, i32, i32, i32) {
    %c0_i32 = arith.constant 0 : i32
    %c0_i32_0 = arith.constant 0 : i32
    %c0_i32_1 = arith.constant 0 : i32
    return %arg0, %c0_i32, %arg1, %c0_i32_0 : i32, i32, i32, i32
  }
  func.func @transform_1(%arg0: i32, %arg1: i32, %arg2: memref<16xf32, #tpu.memory_space<smem>>, %arg3: memref<4xf32, #tpu.memory_space<smem>>) -> (i32, i32, i32, i32) {
    %c0_i32 = arith.constant 0 : i32
    %c0_i32_0 = arith.constant 0 : i32
    %c0_i32_1 = arith.constant 0 : i32
    return %arg0, %c0_i32, %arg1, %c0_i32_0 : i32, i32, i32, i32
  }
}

</mosaic_0001>

<bundles_post_ra>
// kernel: _unnamed_function_.1
= control target key start
LH: loop header
LB: loop body
LE: loop exit
PB: predicated region body
PF: predicated region fallthrough
CT: control target
= control target key end

     0   :  { %s553_s0 = inlined_call_operand.vmem [shape: f32[16], index: 0, kind: input, shape index: {}]   ;;  %s554_s2 = inlined_call_operand.vmem [shape: f32[2,4,2,128], index: 2, kind: input, shape index: {}]   ;;  %s555_s3 = inlined_call_operand.vmem [shape: f32[2,4,2,128], index: 3, kind: output, shape index: {}]   ;;  %s556_s1 = inlined_call_operand.vmem [shape: f32[4], index: 1, kind: input, shape index: {}]  }
   0x1   :  { %s8_s14 = sshll.u32 %s553_s0, 4  ;;  %s12_s17 = sshll.u32 %s556_s1, 4  ;;  %s9_s14 = int_to_ptr.vmem [resolvable:$true] %s8_s14  ;;  %s13_s17 = int_to_ptr.vmem [resolvable:$true] %s12_s17 }
   0x2   :  { %s396_s18 = scalar_lea.vmem %s9_s14, 16  ;;  %p401_p1 = scmp.lt.s32.totalorder %s9_s14, %s9_s14 }
   0x3   :  { %p397_p0 = scmp.ne.s32.totalorder %s9_s14, %s396_s18  ;;  %p402_p2 = scmp.lt.s32.totalorder %s396_s18, %s396_s18 }
   0x5   :  { %p403_p3 = por %p402_p2, %p401_p1 }
   0x7   :  { %p404_p4 = pnand %p403_p3, %p397_p0 }
   0x9   :  { %407 = shalt.err (!%p404_p4)  }
   0xa   :  { %s446_s19 = smov [#allocation3]   ;;  %s408_s20 = scalar_lea.vmem %s13_s17, 16 }
   0xb   :  { %11 = dma.vmem_to_smem %s9_s14, 16, %s446_s19, [#allocation2] }
   0xc   :  { %p409_p5 = scmp.ne.s32.totalorder %s13_s17, %s408_s20  ;;  %p413_p6 = scmp.lt.s32.totalorder %s13_s17, %s13_s17 }
   0xd   :  { %p414_p7 = scmp.lt.s32.totalorder %s408_s20, %s408_s20 }
   0xf   :  { %p415_p8 = por %p414_p7, %p413_p6 }
  0x11   :  { %p416_p9 = pnand %p415_p8, %p409_p5 }
  0x13   :  { %419 = shalt.err (!%p416_p9)  }
  0x14   :  { %s447_s0 = smov [#allocation4]  }
  0x15   :  { %15 = dma.vmem_to_smem %s13_s17, 16, %s447_s0, [#allocation2] }
  0x16   :  { %432 = dma.done.wait [#allocation2], 32 }
  0x17   :  { %433 = vsyncadd [#allocation2], 4294967264 }
  0x18   :  { %17 = sfence }
  0x19   :  { %s474_s1 = smov 0   ;;  %s476_s21 = smov 0  }
  0x1a   :  { %s478_s22 = smov 0  }
  0x1b LB: > { %s35_s23 = sadd.s32 1, %s440_s21  ;;  %p337_p10 = scmp.ge.s32.totalorder %s444_s22, 1  ;;  %s444_s22 = sphi %s478_s22, %s23_s22   ;;  %s440_s21 = sphi %s476_s21, %s558_s21   ;;  %s436_s1 = sphi %s474_s1, %s557_s1  }
  0x1c   : > { %p37_p11 = scmp.ge.s32.totalorder %s35_s23, 2  ;;  %p118_p12 = scmp.lt.s32.totalorder %s444_s22, 3 }
  0x1e   : > { %s560_s23 = smov (%p37_p11, %s35_s23), 0  ;;  %p119_p13 = pnand %p337_p10, %p118_p12 }
  0x1f   : > { %p144_p0 = scmp.lt.s32.totalorder (!%p119_p13), %s436_s1, 1  ;;  %s167_s24 = sld [smem:[#allocation4]] (!%p119_p13) }
  0x20   : > { %122 = sbr.rel (%p119_p13) target bundleno = 61 (0x3d), region = 24  ;;  %s170_s25 = sld [smem:[#allocation3]] (!%p119_p13) }
  0x21   : > { %s345_s26 = sld [smem:[#allocation3 + $0x1]] (!%p119_p13)  ;;  %s346_s27 = sld [smem:[#allocation3 + $0x2]] (!%p119_p13) }
  0x22   : > { %s347_s28 = sld [smem:[#allocation3 + $0x3]] (!%p119_p13)  ;;  %s348_s30 = sld [smem:[#allocation4 + $0x1]] (!%p119_p13) }
  0x23   : > { %s349_s7 = sld [smem:[#allocation3 + $0x4]] (!%p119_p13)  ;;  %s350_s8 = sld [smem:[#allocation3 + $0x5]] (!%p119_p13) }
  0x24   : > { %s500_s9 = sld [smem:[#allocation3 + $0x6]] (!%p119_p13)  ;;  %s502_s10 = sld [smem:[#allocation3 + $0x7]] (!%p119_p13) }
  0x25   : > { %v168_v1 = vstv (!%p119_p13), %s167_s24  ;;  %s354_s11 = sld [smem:[#allocation4 + $0x2]] (!%p119_p13)  ;;  %s504_s12 = sld [smem:[#allocation3 + $0x8]] (!%p119_p13) }
  0x26   : > { %v171_v4 = vstv (!%p119_p13), %s170_s25  ;;  %s506_s13 = sld [smem:[#allocation3 + $0x9]] (!%p119_p13)  ;;  %s508_s14 = sld [smem:[#allocation3 + $0xa]] (!%p119_p13) }
  0x27   : > { %s562_s1 = smov (!%p144_p0, %s436_s1), 1  ;;  %v175_v5 = vstv %s345_s26  ;;  %v179_v9 = vstv %s346_s27  ;;  %s510_s15 = sld [smem:[#allocation3 + $0xb]] }
  0x28   : > { %s368_s29 = sshll.u32 %s562_s1, 3  ;;  %v183_v10 = vstv %s347_s28  ;;  %v188_v13 = vstv %s348_s30  ;;  %s512_s16 = sld [smem:[#allocation4 + $0x3]] }
  0x29   : > { %s151_s6 = scalar_lea.vmem %s554_s2, %s368_s29  ;;  %s514_s17 = sld [smem:[#allocation3 + $0xc]]  ;;  %v191_v18 = vstv %s349_s7  ;;  %v195_v19 = vstv %s350_s8 }
  0x2a   : > { %v160_v0 = vld [vmem:[%s151_s6] sm:$0x3]  ;;  %v342_v2 = vld [vmem:[%s151_s6 + $0x2] sm:$0x3]  ;;  %v343_v8 = vld [vmem:[%s151_s6 + $0x4] sm:$0x3]  ;;  %v199_v23 = vstv %s500_s9  ;;  %s528_s25 = scalar_lea.vmem %s555_s3, %s368_s29 }
  0x2b   : > { %v169_v3 = vadd.f32 %v168_v1, %v160_v0  ;;  %v172_v6 = vmul.f32 %v171_v4, %v160_v0  ;;  %v176_v7 = vmul.f32 %v342_v2, %v175_v5  ;;  %v180_v12 = vmul.f32 %v343_v8, %v179_v9  ;;  %v344_v14 = vld [vmem:[%s151_s6 + $0x6] sm:$0x3]  ;;  %s516_s18 = sld [smem:[#allocation3 + $0xd]]  ;;  %s518_s19 = sld [smem:[#allocation3 + $0xe]] }
  0x2c   : > { %v184_v16 = vmul.f32 %v344_v14, %v183_v10  ;;  %v189_v17 = vadd.f32 %v342_v2, %v188_v13  ;;  %s520_s20 = sld [smem:[#allocation3 + $0xf]]  ;;  %v192_v21 = vmul.f32 %v191_v18, %v160_v0  ;;  %v196_v22 = vmul.f32 %v342_v2, %v195_v19 }
  0x2d   : > { %v173_v11 = vadd.f32 %v172_v6, %v169_v3  ;;  %v203_v24 = vstv %s502_s10  ;;  %v209_v25 = vstv %s354_s11  ;;  %v212_v26 = vstv %s504_s12 }
  0x2e   : > { %v193_v28 = vadd.f32 %v192_v21, %v189_v17  ;;  %v200_v29 = vmul.f32 %v343_v8, %v199_v23  ;;  %v210_v30 = vadd.f32 %v343_v8, %v209_v25  ;;  %v204_v31 = vmul.f32 %v344_v14, %v203_v24 }
  0x2f   : > { %v177_v15 = vadd.f32 %v176_v7, %v173_v11  ;;  %v213_v32 = vmul.f32 %v212_v26, %v160_v0  ;;  %v216_v33 = vstv %s506_s13  ;;  %v220_v34 = vstv %s508_s14 }
  0x30   : > { %v197_v35 = vadd.f32 %v196_v22, %v193_v28  ;;  %v217_v36 = vmul.f32 %v342_v2, %v216_v33  ;;  %v221_v37 = vmul.f32 %v343_v8, %v220_v34  ;;  %v224_v38 = vstv %s510_s15 }
  0x31   : > { %v181_v20 = vadd.f32 %v180_v12, %v177_v15  ;;  %v214_v39 = vadd.f32 %v213_v32, %v210_v30  ;;  %v230_v40 = vstv %s512_s16  ;;  %v233_v41 = vstv %s514_s17 }
  0x32   : > { %v237_v42 = vstv %s516_s18  ;;  %v201_v43 = vadd.f32 %v200_v29, %v197_v35  ;;  %v231_v44 = vadd.f32 %v344_v14, %v230_v40  ;;  %v234_v45 = vmul.f32 %v233_v41, %v160_v0 }
  0x33   : > { %v185_v27 = vadd.f32 %v184_v16, %v181_v20  ;;  %v238_v46 = vmul.f32 %v342_v2, %v237_v42  ;;  %v218_v47 = vadd.f32 %v217_v36, %v214_v39  ;;  %v225_v48 = vmul.f32 %v344_v14, %v224_v38 }
  0x34   : > { %v241_v49 = vstv %s518_s19  ;;  %v245_v50 = vstv %s520_s20  ;;  %v205_v51 = vadd.f32 %v204_v31, %v201_v43  ;;  %v235_v52 = vadd.f32 %v234_v45, %v231_v44 }
  0x35   : > { %186 = vst [vmem:[%s528_s25] sm:$0x3] %v185_v27  ;;  %v242_v53 = vmul.f32 %v343_v8, %v241_v49  ;;  %v222_v54 = vadd.f32 %v221_v37, %v218_v47  ;;  %v246_v56 = vmul.f32 %v344_v14, %v245_v50 }
  0x36   : > { %353 = vst [vmem:[%s528_s25 + $0x2] sm:$0x3] %v205_v51  ;;  %v239_v55 = vadd.f32 %v238_v46, %v235_v52 }
  0x37   : > { %v226_v57 = vadd.f32 %v225_v48, %v222_v54 }
  0x38   : > { %v243_v58 = vadd.f32 %v242_v53, %v239_v55 }
  0x39   : > { %359 = vst [vmem:[%s528_s25 + $0x4] sm:$0x3] %v226_v57 }
  0x3a   : > { %v247_v59 = vadd.f32 %v246_v56, %v243_v58 }
  0x3c   : > { %365 = vst [vmem:[%s528_s25 + $0x6] sm:$0x3] %v247_v59 }
  0x3d PF: > { %s23_s22 = sadd.s32 1, %s444_s22   ;;  %s557_s1 = smov %s440_s21 }
  0x3e   : > { %p20_p1 = scmp.ge.s32.totalorder %s23_s22, 4   ;;  %s558_s21 = smov %s560_s23 }
  0x40   :  { %22 = sbr.rel (!%p20_p1) target bundleno = 27 (0x1b), region = 60 }

</bundles_post_ra>
